<compile_context>
chip_gen: v6e
topology: v6e:2x2x1
jax: 0.10.0
libtpu: 0.0.40
codegen_flags: <defaults>
</compile_context>

<pallas_src>
import math

import jax
import jax.numpy as jnp
from jax.experimental import pallas as pl
from jax.experimental.pallas import tpu as pltpu

D_MODEL = 32  # true model dim of the example (padded to 128 lanes internally)


# --------------------------------------------------------------------------
# Fused encoder (self-attn) + decoder (cross-attn) kernel for one batch tile.
# Inputs are batch-flattened, lane-dense slabs: src (bt*Ssp, DP), tgt (bt*Stp, DP).
# --------------------------------------------------------------------------
def _make_encdec_kernel(bt, ssp, stp, ss_valid):
    def kernel(src_ref, tgt_ref, e_wqkv_ref, e_wo_ref,
               d_wq_ref, d_wkv_ref, d_wo_ref,
               enc_out_ref, dec_out_ref):
        dp = src_ref.shape[-1]
        f32 = jnp.float32

        src = src_ref[...]                      # (bt*ssp, dp) full-vreg load
        tgt = tgt_ref[...]                      # (bt*stp, dp)

        # Key-position mask, only materialized when the source sequence had to
        # be padded up to a sublane multiple (never for the demo shapes).
        if ss_valid != ssp:
            key_ids = jax.lax.broadcasted_iota(jnp.int32, (1, 1, ssp), 2)
            key_bias = jnp.where(key_ids < ss_valid, 0.0, -1e30).astype(f32)
        else:
            key_bias = None

        def softmax_keys(s):                    # (bt, Sq, Skv) softmax over keys
            if key_bias is not None:
                s = s + key_bias
            m = jnp.max(s, axis=-1, keepdims=True)
            p = jnp.exp(s - m)
            return p / jnp.sum(p, axis=-1, keepdims=True)  # exact normalization

        # ------------------- encoder self-attention -------------------------
        # One fused QKV projection for the whole batch tile (scale is already
        # folded into the Q columns at pack time).
        e_qkv = jnp.dot(src, e_wqkv_ref[...],
                        preferred_element_type=f32)          # (bt*ssp, 3dp)
        eq = e_qkv[:, :dp].reshape(bt, ssp, dp)
        ek = e_qkv[:, dp:2 * dp].reshape(bt, ssp, dp)
        ev = e_qkv[:, 2 * dp:].reshape(bt, ssp, dp)

        e_p = softmax_keys(jnp.einsum('bqd,bkd->bqk', eq, ek,
                                      preferred_element_type=f32))
        e_ctx = jnp.einsum('bqk,bkd->bqd', e_p, ev,
                           preferred_element_type=f32).reshape(bt * ssp, dp)
        enc = src.astype(f32) + jnp.dot(e_ctx, e_wo_ref[...].astype(f32),
                                        preferred_element_type=f32)
        enc_out_ref[...] = enc.astype(enc_out_ref.dtype)

        # ------------- decoder cross-attention (enc stays in VMEM) ----------
        d_q = jnp.dot(tgt, d_wq_ref[...],
                      preferred_element_type=f32).reshape(bt, stp, dp)
        d_kv = jnp.dot(enc, d_wkv_ref[...].astype(f32),
                       preferred_element_type=f32)            # (bt*ssp, 2dp)
        dk = d_kv[:, :dp].reshape(bt, ssp, dp)
        dv = d_kv[:, dp:].reshape(bt, ssp, dp)

        d_p = softmax_keys(jnp.einsum('bqd,bkd->bqk', d_q, dk,
                                      preferred_element_type=f32))
        d_ctx = jnp.einsum('bqk,bkd->bqd', d_p, dv,
                           preferred_element_type=f32).reshape(bt * stp, dp)
        dec = tgt.astype(f32) + jnp.dot(d_ctx, d_wo_ref[...].astype(f32),
                                        preferred_element_type=f32)
        dec_out_ref[...] = dec.astype(dec_out_ref.dtype)

    return kernel


# --------------------------------------------------------------------------
# Parameter init / packing
# --------------------------------------------------------------------------
def init_params(key, d=D_MODEL):
    """Deterministic params for encoder (self-attn) and decoder (cross-attn)."""
    keys = jax.random.split(key, 8)
    scale = 1.0 / math.sqrt(d)
    mk = lambda k: jax.random.normal(k, (d, d), jnp.float32) * scale
    enc = dict(wq=mk(keys[0]), wk=mk(keys[1]), wv=mk(keys[2]), wo=mk(keys[3]))
    dec = dict(wq=mk(keys[4]), wk=mk(keys[5]), wv=mk(keys[6]), wo=mk(keys[7]))
    return enc, dec


def _round_up(n, m):
    return ((n + m - 1) // m) * m


def _pack_weights(enc_p, dec_p, dp, scale, dtype):
    """Zero-pad each (D,D) weight to (dp,dp), fold the 1/sqrt(D) score scale
    into the Q projections, and fuse QKV / KV along output columns."""
    def pad(w):
        r, c = w.shape
        return jnp.pad(w, ((0, dp - r), (0, dp - c)))
    e_wqkv = jnp.concatenate([pad(enc_p["wq"] * scale), pad(enc_p["wk"]),
                              pad(enc_p["wv"])], axis=1).astype(dtype)    # (dp, 3dp)
    e_wo = pad(enc_p["wo"]).astype(dtype)
    d_wq = pad(dec_p["wq"] * scale).astype(dtype)
    d_wkv = jnp.concatenate([pad(dec_p["wk"]), pad(dec_p["wv"])],
                            axis=1).astype(dtype)                         # (dp, 2dp)
    d_wo = pad(dec_p["wo"]).astype(dtype)
    return e_wqkv, e_wo, d_wq, d_wkv, d_wo


def _pick_batch_tile(batch, rows_per_example):
    """Largest divisor of `batch` giving ~512 rows per grid step, but keep >=2
    grid steps (so the 'parallel' axis can shard across v7x's two TensorCores)
    once the batch is large enough to afford it."""
    target = max(1, 512 // max(rows_per_example, 1))
    bt = 1
    for c in range(1, batch + 1):
        if batch % c == 0 and c <= target:
            bt = c
    if bt == batch and batch % 2 == 0 and (batch // 2) * rows_per_example >= 256:
        bt = batch // 2
    return bt


# --------------------------------------------------------------------------
# Forward: mirrors EncoderDecoder.forward
# --------------------------------------------------------------------------
def encoder_decoder_forward(params, x, ind, compute_dtype=jnp.bfloat16):
    enc_p, dec_p = params
    B, S, D = x.shape
    # TODO(synk): ind == 0 (the PyTorch default) feeds the encoder an empty
    # sequence; zero-size blocks have no Pallas equivalent, so it is rejected.
    assert 0 < ind < S, "ind must split x into non-empty source/target"

    Ss, St = ind, S - ind
    Ssp, Stp = _round_up(Ss, 8), _round_up(St, 8)   # sublane-dense row counts
    DP = _round_up(D, 128)                          # lane-dense feature dim
    scale = 1.0 / math.sqrt(D)                      # scale uses the TRUE model dim

    # TODO(synk): the feature pad to 128 lanes (and the trailing [:D] slice)
    # are wrapper-side XLA passes over the activations; with a production
    # model dim that is a multiple of 128 they disappear entirely.
    def prep(a, sp):
        b, s_, d_ = a.shape
        a = jnp.pad(a, ((0, 0), (0, sp - s_), (0, DP - d_)))
        return a.reshape(b * sp, DP).astype(compute_dtype)  # flat, lane-dense slab

    src2 = prep(x[:, :ind, :], Ssp)       # (B*Ssp, DP)
    tgt2 = prep(x[:, ind:, :], Stp)       # (B*Stp, DP)

    weights = _pack_weights(enc_p, dec_p, DP, scale, compute_dtype)

    bt = _pick_batch_tile(B, max(Ssp, Stp))
    nb = B // bt

    flops = 2 * B * (Ssp * DP * 3 * DP          # enc fused QKV proj
                     + 2 * Ssp * Ssp * DP       # enc scores + ctx
                     + Ssp * DP * DP            # enc out proj
                     + Stp * DP * DP            # dec Q proj
                     + Ssp * DP * 2 * DP        # dec fused KV proj
                     + 2 * Stp * Ssp * DP       # dec scores + ctx
                     + Stp * DP * DP)           # dec out proj
    transcendentals = B * (Ssp * Ssp + Stp * Ssp)
    itemsize = jnp.dtype(compute_dtype).itemsize
    bytes_accessed = (itemsize * (B * (Ssp + Stp) * DP + 8 * DP * DP)
                      + 4 * B * (Ssp + Stp) * DP)

    kernel = _make_encdec_kernel(bt, Ssp, Stp, Ss)
    w_spec = lambda shape: pl.BlockSpec(shape, lambda b: (0, 0))

    enc_flat, dec_flat = pl.pallas_call(
        kernel,
        out_shape=(jax.ShapeDtypeStruct((B * Ssp, DP), jnp.float32),
                   jax.ShapeDtypeStruct((B * Stp, DP), jnp.float32)),
        grid=(nb,),
        in_specs=[
            pl.BlockSpec((bt * Ssp, DP), lambda b: (b, 0)),
            pl.BlockSpec((bt * Stp, DP), lambda b: (b, 0)),
            w_spec((DP, 3 * DP)),
            w_spec((DP, DP)),
            w_spec((DP, DP)),
            w_spec((DP, 2 * DP)),
            w_spec((DP, DP)),
        ],
        out_specs=(
            pl.BlockSpec((bt * Ssp, DP), lambda b: (b, 0)),
            pl.BlockSpec((bt * Stp, DP), lambda b: (b, 0)),
        ),
        compiler_params=pltpu.CompilerParams(dimension_semantics=("parallel",)),
        cost_estimate=pl.CostEstimate(flops=flops,
                                      transcendentals=transcendentals,
                                      bytes_accessed=bytes_accessed),
    )(src2, tgt2, *weights)

    # Strip the sublane / lane padding (exactly zero-influence by construction).
    enc_emb = enc_flat.reshape(B, Ssp, DP)[:, :Ss, :D]
    out = dec_flat.reshape(B, Stp, DP)[:, :St, :D]
    return enc_emb, out


# --------------------------------------------------------------------------
# Pure-JAX reference (same semantics) for a sanity check.
# --------------------------------------------------------------------------
def _ref_forward(params, x, ind):
    enc_p, dec_p = params
    d = x.shape[-1]
    scale = 1.0 / math.sqrt(d)

    def attn(q_in, kv_in, p):
        q = q_in @ p["wq"]
        k = kv_in @ p["wk"]
        v = kv_in @ p["wv"]
        s = jnp.einsum("bqd,bkd->bqk", q, k) * scale
        a = jax.nn.softmax(s, axis=-1)
        return q_in + jnp.einsum("bqk,bkd->bqd", a, v) @ p["wo"]

    src, tgt = x[:, :ind, :], x[:, ind:, :]
    enc = attn(src, src, enc_p)
    out = attn(tgt, enc, dec_p)
    return enc, out


if __name__ == "__main__":
    B, S, D = 2, 16, D_MODEL
    ind = 8  # split point; ind=0 (the PyTorch default) would give the encoder
             # an empty sequence, so pick a meaningful split for the example.
    key = jax.random.PRNGKey(0)
    k_x, k_p = jax.random.split(key)
    x = jax.random.normal(k_x, (B, S, D), jnp.float32)
    params = init_params(k_p)

    ref_enc, ref_out = _ref_forward(params, x, ind)

    # f32 compute path: tight parity with the pure-JAX reference.
    enc32, out32 = encoder_decoder_forward(params, x, ind,
                                           compute_dtype=jnp.float32)
    jax.block_until_ready((enc32, out32))
    assert enc32.shape == (B, ind, D)
    assert out32.shape == (B, S - ind, D)
    assert jnp.allclose(enc32, ref_enc, rtol=1e-4, atol=1e-4)
    assert jnp.allclose(out32, ref_out, rtol=1e-4, atol=1e-4)

    # bf16 compute path (the perf configuration: bf16 MXU operands, f32
    # accumulation). Loose tolerance absorbs only the bf16 rounding of the
    # inputs/weights; normalization itself is exact.
    enc_emb, out = encoder_decoder_forward(params, x, ind,
                                           compute_dtype=jnp.bfloat16)
    jax.block_until_ready((enc_emb, out))
    assert enc_emb.shape == (B, ind, D)
    assert out.shape == (B, S - ind, D)
    assert jnp.allclose(enc_emb, ref_enc, rtol=5e-2, atol=5e-2)
    assert jnp.allclose(out, ref_out, rtol=5e-2, atol=5e-2)

    print("KERNEL_OK")
</pallas_src>

<mosaic_0001>
module attributes {stable_mosaic.version = 11 : i64} {
  func.func @kernel(%arg0: i32, %arg1: memref<16x128xf32, #tpu.memory_space<vmem>>, %arg2: memref<16x128xf32, #tpu.memory_space<vmem>>, %arg3: memref<128x384xf32, #tpu.memory_space<vmem>>, %arg4: memref<128x128xf32, #tpu.memory_space<vmem>>, %arg5: memref<128x128xf32, #tpu.memory_space<vmem>>, %arg6: memref<128x256xf32, #tpu.memory_space<vmem>>, %arg7: memref<128x128xf32, #tpu.memory_space<vmem>>, %arg8: memref<16x128xf32, #tpu.memory_space<vmem>>, %arg9: memref<16x128xf32, #tpu.memory_space<vmem>>) attributes {dimension_semantics = [#tpu.dimension_semantics<parallel>], iteration_bounds = array<i64: 1>, scalar_prefetch = 0 : i64, scratch_operands = 0 : i64, tpu.core_type = #tpu.core_type<tc>, window_params = [{transform_indices = @transform_0, window_bounds = array<i64: 16, 128>}, {transform_indices = @transform_1, window_bounds = array<i64: 16, 128>}, {pipeline_mode = #tpu.pipeline_mode<synchronous>, transform_indices = @transform_2, window_bounds = array<i64: 128, 384>}, {pipeline_mode = #tpu.pipeline_mode<synchronous>, transform_indices = @transform_3, window_bounds = array<i64: 128, 128>}, {pipeline_mode = #tpu.pipeline_mode<synchronous>, transform_indices = @transform_4, window_bounds = array<i64: 128, 128>}, {pipeline_mode = #tpu.pipeline_mode<synchronous>, transform_indices = @transform_5, window_bounds = array<i64: 128, 256>}, {pipeline_mode = #tpu.pipeline_mode<synchronous>, transform_indices = @transform_6, window_bounds = array<i64: 128, 128>}, {transform_indices = @transform_7, window_bounds = array<i64: 16, 128>}, {transform_indices = @transform_8, window_bounds = array<i64: 16, 128>}]} {
    %c0 = arith.constant 0 : index
    %c0_0 = arith.constant 0 : index
    %0 = vector.load %arg1[%c0, %c0_0] : memref<16x128xf32, #tpu.memory_space<vmem>>, vector<16x128xf32>
    %c0_1 = arith.constant 0 : index
    %c0_2 = arith.constant 0 : index
    %1 = vector.load %arg2[%c0_1, %c0_2] : memref<16x128xf32, #tpu.memory_space<vmem>>, vector<16x128xf32>
    %c0_3 = arith.constant 0 : index
    %c0_4 = arith.constant 0 : index
    %2 = vector.load %arg3[%c0_3, %c0_4] : memref<128x384xf32, #tpu.memory_space<vmem>>, vector<128x384xf32>
    %cst = arith.constant dense<0.000000e+00> : vector<16x384xf32>
    %3 = tpu.matmul %0, %2, %cst {dimension_numbers = #tpu.dot_dimension_numbers<[1], [0], [0], [1], [0, 0, 1, 1], [], []>} : vector<16x128xf32>, vector<128x384xf32>, vector<16x384xf32> -> vector<16x384xf32>
    %4 = vector.extract_strided_slice %3 {offsets = [0, 0], sizes = [16, 128], strides = [1, 1]} : vector<16x384xf32> to vector<16x128xf32>
    %5 = vector.shape_cast %4 : vector<16x128xf32> to vector<2x8x128xf32>
    %6 = vector.extract_strided_slice %3 {offsets = [0, 128], sizes = [16, 128], strides = [1, 1]} : vector<16x384xf32> to vector<16x128xf32>
    %7 = vector.shape_cast %6 : vector<16x128xf32> to vector<2x8x128xf32>
    %8 = vector.extract_strided_slice %3 {offsets = [0, 256], sizes = [16, 128], strides = [1, 1]} : vector<16x384xf32> to vector<16x128xf32>
    %9 = vector.shape_cast %8 : vector<16x128xf32> to vector<2x8x128xf32>
    "tpu.trace_start"() <{level = 10 : i32, message = "bqd,bkd->bqk"}> : () -> ()
    %cst_5 = arith.constant dense<0.000000e+00> : vector<2x8x8xf32>
    %10 = tpu.matmul %5, %7, %cst_5 {dimension_numbers = #tpu.dot_dimension_numbers<[2], [2], [1], [1], [0, 0, 0, 1, 1, 1], [0], [0]>} : vector<2x8x128xf32>, vector<2x8x128xf32>, vector<2x8x8xf32> -> vector<2x8x8xf32>
    "tpu.trace_stop"() : () -> ()
    %cst_6 = arith.constant dense<0xFF800000> : vector<2x8xf32>
    %11 = vector.multi_reduction <maximumf>, %10, %cst_6 [2] : vector<2x8x8xf32> to vector<2x8xf32>
    %12 = vector.shape_cast %11 : vector<2x8xf32> to vector<2x8x1xf32>
    %13 = vector.broadcast %12 : vector<2x8x1xf32> to vector<2x8x8xf32>
    %14 = arith.subf %10, %13 : vector<2x8x8xf32>
    %15 = math.exp %14 : vector<2x8x8xf32>
    %cst_7 = arith.constant dense<0.000000e+00> : vector<2x8xf32>
    %16 = vector.multi_reduction <add>, %15, %cst_7 [2] : vector<2x8x8xf32> to vector<2x8xf32>
    %17 = vector.shape_cast %16 : vector<2x8xf32> to vector<2x8x1xf32>
    %18 = vector.broadcast %17 : vector<2x8x1xf32> to vector<2x8x8xf32>
    %19 = arith.divf %15, %18 : vector<2x8x8xf32>
    "tpu.trace_start"() <{level = 10 : i32, message = "bqk,bkd->bqd"}> : () -> ()
    %cst_8 = arith.constant dense<0.000000e+00> : vector<2x8x128xf32>
    %20 = tpu.matmul %19, %9, %cst_8 {dimension_numbers = #tpu.dot_dimension_numbers<[2], [1], [1], [2], [0, 0, 0, 1, 1, 2], [0], [0]>} : vector<2x8x8xf32>, vector<2x8x128xf32>, vector<2x8x128xf32> -> vector<2x8x128xf32>
    "tpu.trace_stop"() : () -> ()
    %21 = vector.shape_cast %20 : vector<2x8x128xf32> to vector<16x128xf32>
    %c0_9 = arith.constant 0 : index
    %c0_10 = arith.constant 0 : index
    %22 = vector.load %arg4[%c0_9, %c0_10] : memref<128x128xf32, #tpu.memory_space<vmem>>, vector<128x128xf32>
    %cst_11 = arith.constant dense<0.000000e+00> : vector<16x128xf32>
    %23 = tpu.matmul %21, %22, %cst_11 {dimension_numbers = #tpu.dot_dimension_numbers<[1], [0], [0], [1], [0, 0, 1, 1], [], []>} : vector<16x128xf32>, vector<128x128xf32>, vector<16x128xf32> -> vector<16x128xf32>
    %24 = arith.addf %0, %23 : vector<16x128xf32>
    %c0_12 = arith.constant 0 : index
    %c0_13 = arith.constant 0 : index
    %25 = vector.load %arg8[%c0_12, %c0_13] : memref<16x128xf32, #tpu.memory_space<vmem>>, vector<16x128xf32>
    tpu.vector_store %arg8[%c0_12, %c0_13], %24 {strides = array<i32>} : memref<16x128xf32, #tpu.memory_space<vmem>>, vector<16x128xf32>,
    %c0_14 = arith.constant 0 : index
    %c0_15 = arith.constant 0 : index
    %26 = vector.load %arg5[%c0_14, %c0_15] : memref<128x128xf32, #tpu.memory_space<vmem>>, vector<128x128xf32>
    %cst_16 = arith.constant dense<0.000000e+00> : vector<16x128xf32>
    %27 = tpu.matmul %1, %26, %cst_16 {dimension_numbers = #tpu.dot_dimension_numbers<[1], [0], [0], [1], [0, 0, 1, 1], [], []>} : vector<16x128xf32>, vector<128x128xf32>, vector<16x128xf32> -> vector<16x128xf32>
    %28 = vector.shape_cast %27 : vector<16x128xf32> to vector<2x8x128xf32>
    %c0_17 = arith.constant 0 : index
    %c0_18 = arith.constant 0 : index
    %29 = vector.load %arg6[%c0_17, %c0_18] : memref<128x256xf32, #tpu.memory_space<vmem>>, vector<128x256xf32>
    %cst_19 = arith.constant dense<0.000000e+00> : vector<16x256xf32>
    %30 = tpu.matmul %24, %29, %cst_19 {dimension_numbers = #tpu.dot_dimension_numbers<[1], [0], [0], [1], [0, 0, 1, 1], [], []>} : vector<16x128xf32>, vector<128x256xf32>, vector<16x256xf32> -> vector<16x256xf32>
    %31 = vector.extract_strided_slice %30 {offsets = [0, 0], sizes = [16, 128], strides = [1, 1]} : vector<16x256xf32> to vector<16x128xf32>
    %32 = vector.shape_cast %31 : vector<16x128xf32> to vector<2x8x128xf32>
    %33 = vector.extract_strided_slice %30 {offsets = [0, 128], sizes = [16, 128], strides = [1, 1]} : vector<16x256xf32> to vector<16x128xf32>
    %34 = vector.shape_cast %33 : vector<16x128xf32> to vector<2x8x128xf32>
    "tpu.trace_start"() <{level = 10 : i32, message = "bqd,bkd->bqk"}> : () -> ()
    %cst_20 = arith.constant dense<0.000000e+00> : vector<2x8x8xf32>
    %35 = tpu.matmul %28, %32, %cst_20 {dimension_numbers = #tpu.dot_dimension_numbers<[2], [2], [1], [1], [0, 0, 0, 1, 1, 1], [0], [0]>} : vector<2x8x128xf32>, vector<2x8x128xf32>, vector<2x8x8xf32> -> vector<2x8x8xf32>
    "tpu.trace_stop"() : () -> ()
    %cst_21 = arith.constant dense<0xFF800000> : vector<2x8xf32>
    %36 = vector.multi_reduction <maximumf>, %35, %cst_21 [2] : vector<2x8x8xf32> to vector<2x8xf32>
    %37 = vector.shape_cast %36 : vector<2x8xf32> to vector<2x8x1xf32>
    %38 = vector.broadcast %37 : vector<2x8x1xf32> to vector<2x8x8xf32>
    %39 = arith.subf %35, %38 : vector<2x8x8xf32>
    %40 = math.exp %39 : vector<2x8x8xf32>
    %cst_22 = arith.constant dense<0.000000e+00> : vector<2x8xf32>
    %41 = vector.multi_reduction <add>, %40, %cst_22 [2] : vector<2x8x8xf32> to vector<2x8xf32>
    %42 = vector.shape_cast %41 : vector<2x8xf32> to vector<2x8x1xf32>
    %43 = vector.broadcast %42 : vector<2x8x1xf32> to vector<2x8x8xf32>
    %44 = arith.divf %40, %43 : vector<2x8x8xf32>
    "tpu.trace_start"() <{level = 10 : i32, message = "bqk,bkd->bqd"}> : () -> ()
    %cst_23 = arith.constant dense<0.000000e+00> : vector<2x8x128xf32>
    %45 = tpu.matmul %44, %34, %cst_23 {dimension_numbers = #tpu.dot_dimension_numbers<[2], [1], [1], [2], [0, 0, 0, 1, 1, 2], [0], [0]>} : vector<2x8x8xf32>, vector<2x8x128xf32>, vector<2x8x128xf32> -> vector<2x8x128xf32>
    "tpu.trace_stop"() : () -> ()
    %46 = vector.shape_cast %45 : vector<2x8x128xf32> to vector<16x128xf32>
    %c0_24 = arith.constant 0 : index
    %c0_25 = arith.constant 0 : index
    %47 = vector.load %arg7[%c0_24, %c0_25] : memref<128x128xf32, #tpu.memory_space<vmem>>, vector<128x128xf32>
    %cst_26 = arith.constant dense<0.000000e+00> : vector<16x128xf32>
    %48 = tpu.matmul %46, %47, %cst_26 {dimension_numbers = #tpu.dot_dimension_numbers<[1], [0], [0], [1], [0, 0, 1, 1], [], []>} : vector<16x128xf32>, vector<128x128xf32>, vector<16x128xf32> -> vector<16x128xf32>
    %49 = arith.addf %1, %48 : vector<16x128xf32>
    %c0_27 = arith.constant 0 : index
    %c0_28 = arith.constant 0 : index
    %50 = vector.load %arg9[%c0_27, %c0_28] : memref<16x128xf32, #tpu.memory_space<vmem>>, vector<16x128xf32>
    tpu.vector_store %arg9[%c0_27, %c0_28], %49 {strides = array<i32>} : memref<16x128xf32, #tpu.memory_space<vmem>>, vector<16x128xf32>,
    return
  }
  func.func @transform_0(%arg0: i32) -> (i32, i32) {
    %c0_i32 = arith.constant 0 : i32
    %c0_i32_0 = arith.constant 0 : i32
    return %arg0, %c0_i32 : i32, i32
  }
  func.func @transform_1(%arg0: i32) -> (i32, i32) {
    %c0_i32 = arith.constant 0 : i32
    %c0_i32_0 = arith.constant 0 : i32
    return %arg0, %c0_i32 : i32, i32
  }
  func.func @transform_2(%arg0: i32) -> (i32, i32) {
    %c0_i32 = arith.constant 0 : i32
    %c0_i32_0 = arith.constant 0 : i32
    %c0_i32_1 = arith.constant 0 : i32
    return %c0_i32, %c0_i32_0 : i32, i32
  }
  func.func @transform_3(%arg0: i32) -> (i32, i32) {
    %c0_i32 = arith.constant 0 : i32
    %c0_i32_0 = arith.constant 0 : i32
    %c0_i32_1 = arith.constant 0 : i32
    return %c0_i32, %c0_i32_0 : i32, i32
  }
  func.func @transform_4(%arg0: i32) -> (i32, i32) {
    %c0_i32 = arith.constant 0 : i32
    %c0_i32_0 = arith.constant 0 : i32
    %c0_i32_1 = arith.constant 0 : i32
    return %c0_i32, %c0_i32_0 : i32, i32
  }
  func.func @transform_5(%arg0: i32) -> (i32, i32) {
    %c0_i32 = arith.constant 0 : i32
    %c0_i32_0 = arith.constant 0 : i32
    %c0_i32_1 = arith.constant 0 : i32
    return %c0_i32, %c0_i32_0 : i32, i32
  }
  func.func @transform_6(%arg0: i32) -> (i32, i32) {
    %c0_i32 = arith.constant 0 : i32
    %c0_i32_0 = arith.constant 0 : i32
    %c0_i32_1 = arith.constant 0 : i32
    return %c0_i32, %c0_i32_0 : i32, i32
  }
  func.func @transform_7(%arg0: i32) -> (i32, i32) {
    %c0_i32 = arith.constant 0 : i32
    %c0_i32_0 = arith.constant 0 : i32
    return %arg0, %c0_i32 : i32, i32
  }
  func.func @transform_8(%arg0: i32) -> (i32, i32) {
    %c0_i32 = arith.constant 0 : i32
    %c0_i32_0 = arith.constant 0 : i32
    return %arg0, %c0_i32 : i32, i32
  }
}

</mosaic_0001>

<bundles_post_ra>
// kernel: tpu_custom_call.1
= control target key start
LH: loop header
LB: loop body
LE: loop exit
PB: predicated region body
PF: predicated region fallthrough
CT: control target
= control target key end

     0   :  { %14 = vsyncpa [#allocation3], 0  ;;  %s2037_s0 = inlined_call_operand.hbm [shape: f32[16,128], index: 0, kind: input, shape index: {}]   ;;  %s2038_s1 = inlined_call_operand.hbm [shape: f32[16,128], index: 1, kind: input, shape index: {}]   ;;  %s2039_s2 = inlined_call_operand.hbm [shape: f32[128,384], index: 2, kind: input, shape index: {}]   ;;  %s2040_s3 = inlined_call_operand.hbm [shape: f32[128,128], index: 3, kind: input, shape index: {}]   ;;  %s2041_s4 = inlined_call_operand.hbm [shape: f32[128,128], index: 4, kind: input, shape index: {}]   ;;  %s2042_s5 = inlined_call_operand.hbm [shape: f32[128,256], index: 5, kind: input, shape index: {}]   ;;  %s2043_s6 = inlined_call_operand.hbm [shape: f32[128,128], index: 6, kind: input, shape index: {}]   ;;  %s2044_s7 = inlined_call_operand.hbm [shape: f32[16,128], index: 7, kind: output, shape index: {0}]   ;;  %s2045_s8 = inlined_call_operand.hbm [shape: f32[16,128], index: 8, kind: output, shape index: {1}]  }
   0x1   :  { %15 = vsyncpa [#allocation6], 0 }
   0x2   :  { %16 = vsyncpa [#allocation9], 0 }
   0x3   :  { %17 = vsyncpa [#allocation12], 0 }
   0x4   :  { %18 = vsyncpa [#allocation4], 0 }
   0x5   :  { %19 = vsyncpa [#allocation16], 0  ;;  %s1869_s27 = smov [#allocation5]   ;;  %s1870_s29 = smov [#allocation8]  }
   0x6   :  { %s37_s28 = sshll.u32 %s1869_s27, 4  ;;  %s61_s30 = sshll.u32 %s1870_s29, 4  ;;  %s38_s28 = int_to_ptr.vmem [resolvable:$true] %s37_s28  ;;  %s62_s30 = int_to_ptr.vmem [resolvable:$true] %s61_s30 }
   0x7   :  { %s1685_s9 = scalar_lea.vmem %s38_s28, 256  ;;  %p1690_p1 = scmp.lt.s32.totalorder %s38_s28, %s38_s28 }
   0x8   :  { %p1686_p0 = scmp.ne.s32.totalorder %s38_s28, %s1685_s9  ;;  %p1691_p2 = scmp.lt.s32.totalorder %s1685_s9, %s1685_s9 }
   0xa   :  { %p1692_p3 = por %p1691_p2, %p1690_p1 }
   0xc   :  { %p1693_p4 = pnand %p1692_p3, %p1686_p0 }
   0xe   :  { %1696 = shalt.err (!%p1693_p4)
}
   0xf   :  { %s1871_s10 = smov 128   ;;  %s1872_s11 = smov 8  }
  0x10   :  { %43 = dma.hbm_to_vmem [thread:$0]  %s2038_s1, 256, %s38_s28, [#allocation6], %s1871_s10, %s1871_s10, %s1872_s11  }
  0x11   :  { %s1705_s14 = scalar_lea.vmem %s62_s30, 2048  ;;  %p1710_p6 = scmp.lt.s32.totalorder %s62_s30, %s62_s30 }
  0x12   :  { %p1706_p5 = scmp.ne.s32.totalorder %s62_s30, %s1705_s14  ;;  %p1711_p7 = scmp.lt.s32.totalorder %s1705_s14, %s1705_s14 }
  0x14   :  { %p1712_p8 = por %p1711_p7, %p1710_p6 }
  0x16   :  { %p1713_p9 = pnand %p1712_p8, %p1706_p5 }
  0x18   :  { %1716 = shalt.err (!%p1713_p9)
}
  0x19   :  { %67 = dma.hbm_to_vmem [thread:$0]  %s2040_s3, 2048, %s62_s30, [#allocation9], %s1871_s10, %s1871_s10, %s1872_s11  }
  0x1a   :  { %s1873_s17 = smov [#allocation11]  }
  0x1b   :  { %s85_s18 = sshll.u32 %s1873_s17, 4  ;;  %s86_s18 = int_to_ptr.vmem [resolvable:$true] %s85_s18 }
  0x1c   :  { %s1725_s19 = scalar_lea.vmem %s86_s18, 4096  ;;  %p1730_p11 = scmp.lt.s32.totalorder %s86_s18, %s86_s18 }
  0x1d   :  { %p1726_p10 = scmp.ne.s32.totalorder %s86_s18, %s1725_s19  ;;  %p1731_p12 = scmp.lt.s32.totalorder %s1725_s19, %s1725_s19 }
  0x1f   :  { %p1732_p13 = por %p1731_p12, %p1730_p11 }
  0x21   :  { %p1733_p0 = pnand %p1732_p13, %p1726_p10 }
  0x23   :  { %1736 = shalt.err (!%p1733_p0)
}
  0x24   :  { %s1874_s1 = smov 256   ;;  %s1875_s20 = smov 16  }
  0x25   :  { %91 = dma.hbm_to_vmem [thread:$0]  %s2042_s5, 4096, %s86_s18, [#allocation12], %s1874_s1, %s1874_s1, %s1875_s20  }
  0x26   :  { %s1876_s23 = smov [#allocation2]   ;;  %s1877_s3 = smov [#allocation7]  }
  0x27   :  { %s25_s24 = sshll.u32 %s1876_s23, 4  ;;  %s49_s25 = sshll.u32 %s1877_s3, 4  ;;  %s26_s24 = int_to_ptr.vmem [resolvable:$true] %s25_s24  ;;  %s50_s25 = int_to_ptr.vmem [resolvable:$true] %s49_s25 }
  0x28   :  { %s1745_s26 = scalar_lea.vmem %s26_s24, 256  ;;  %p1750_p2 = scmp.lt.s32.totalorder %s26_s24, %s26_s24 }
  0x29   :  { %p1746_p1 = scmp.ne.s32.totalorder %s26_s24, %s1745_s26  ;;  %p1751_p3 = scmp.lt.s32.totalorder %s1745_s26, %s1745_s26 }
  0x2b   :  { %p1752_p4 = por %p1751_p3, %p1750_p2 }
  0x2d   :  { %p1753_p5 = pnand %p1752_p4, %p1746_p1 }
  0x2f   :  { %1756 = shalt.err (!%p1753_p5)
}
  0x30   :  { %31 = dma.hbm_to_vmem [thread:$0]  %s2037_s0, 256, %s26_s24, [#allocation3], %s1871_s10, %s1871_s10, %s1872_s11  }
  0x31   :  { %s1765_s5 = scalar_lea.vmem %s50_s25, 6144  ;;  %p1770_p7 = scmp.lt.s32.totalorder %s50_s25, %s50_s25 }
  0x32   :  { %p1766_p6 = scmp.ne.s32.totalorder %s50_s25, %s1765_s5  ;;  %p1771_p8 = scmp.lt.s32.totalorder %s1765_s5, %s1765_s5 }
  0x34   :  { %p1772_p9 = por %p1771_p8, %p1770_p7 }
  0x36   :  { %p1773_p10 = pnand %p1772_p9, %p1766_p6 }
  0x38   :  { %1776 = shalt.err (!%p1773_p10)
}
  0x39   :  { %s1878_s29 = smov 384   ;;  %s1879_s30 = smov 24  }
  0x3a   :  { %55 = dma.hbm_to_vmem [thread:$0]  %s2039_s2, 6144, %s50_s25, [#allocation6], %s1878_s29, %s1878_s29, %s1879_s30  }
  0x3b   :  { %s1880_s13 = smov [#allocation10]   ;;  %s1881_s15 = smov [#allocation13]  }
  0x3c   :  { %s73_s14 = sshll.u32 %s1880_s13, 4  ;;  %s97_s16 = sshll.u32 %s1881_s15, 4  ;;  %s74_s14 = int_to_ptr.vmem [resolvable:$true] %s73_s14  ;;  %s98_s16 = int_to_ptr.vmem [resolvable:$true] %s97_s16 }
  0x3d   :  { %s1785_s0 = scalar_lea.vmem %s74_s14, 2048  ;;  %p1790_p12 = scmp.lt.s32.totalorder %s74_s14, %s74_s14 }
  0x3e   :  { %p1786_p11 = scmp.ne.s32.totalorder %s74_s14, %s1785_s0  ;;  %p1791_p13 = scmp.lt.s32.totalorder %s1785_s0, %s1785_s0 }
  0x40   :  { %p1792_p0 = por %p1791_p13, %p1790_p12 }
  0x42   :  { %p1793_p1 = pnand %p1792_p0, %p1786_p11 }
  0x44   :  { %1796 = shalt.err (!%p1793_p1)
}
  0x45   :  { %79 = dma.hbm_to_vmem [thread:$0]  %s2041_s4, 2048, %s74_s14, [#allocation9], %s1871_s10, %s1871_s10, %s1872_s11  }
  0x46   :  { %s1805_s2 = scalar_lea.vmem %s98_s16, 2048  ;;  %p1810_p3 = scmp.lt.s32.totalorder %s98_s16, %s98_s16 }
  0x47   :  { %p1806_p2 = scmp.ne.s32.totalorder %s98_s16, %s1805_s2  ;;  %p1811_p4 = scmp.lt.s32.totalorder %s1805_s2, %s1805_s2 }
  0x49   :  { %p1812_p5 = por %p1811_p4, %p1810_p3 }
  0x4b   :  { %p1813_p6 = pnand %p1812_p5, %p1806_p2 }
  0x4d   :  { %1816 = shalt.err (!%p1813_p6)
}
  0x4e   :  { %103 = dma.hbm_to_vmem [thread:$0]  %s2043_s6, 2048, %s98_s16, [#allocation12], %s1871_s10, %s1871_s10, %s1872_s11  }
  0x4f   :  { %1857 = dma.done.wait [#allocation3], 256  }
  0x50   :  { %1858 = vsyncadd [#allocation3], 4294967040 }
  0x51   :  { %1859 = dma.done.wait [#allocation6], 6400  }
  0x52   :  { %1860 = vsyncadd [#allocation6], 4294960896 }
  0x53   :  { %1861 = dma.done.wait [#allocation9], 4096  }
  0x54   :  { %1862 = vsyncadd [#allocation9], 4294963200 }
  0x55   :  { %1863 = dma.done.wait [#allocation12], 6144  }
  0x56   :  { %1864 = vsyncadd [#allocation12], 4294961152  ;;  %v1882_v0 = vmov 0.0   ;;  %v175_v1 = vld [vmem:[#allocation7 + $0x170] sm:$0xff]  ;;  %v174_v2 = vld [vmem:[#allocation7 + $0x168] sm:$0xff]  ;;  %vm1883_vm0 = vmmov 0  }
  0x57   :  { %241 = vmatprep.mubr.f32.mxu0 %v1882_v0  ;;  %v172_v3 = vld [vmem:[#allocation7 + $0x158] sm:$0xff]  ;;  %177 = vmatprep.subr.mxu0 %v175_v1  ;;  %v171_v4 = vld [vmem:[#allocation7 + $0x150] sm:$0xff]  ;;  %v169_v5 = vld [vmem:[#allocation7 + $0x140] sm:$0xff]  ;;  %vm469_vm1 = vcmask 64512   ;;  %s1884_s4 = smov [#allocation14]  }
  0x58   :  { %178 = vmatpush1.msra.mxu0 %v174_v2  ;;  %v168_v6 = vld [vmem:[#allocation7 + $0x138] sm:$0xff]  ;;  %v166_v7 = vld [vmem:[#allocation7 + $0x128] sm:$0xff]  ;;  %v165_v8 = vld [vmem:[#allocation7 + $0x120] sm:$0xff]  ;;  %s1341_s6 = sshll.u32 %s1884_s4, 4  ;;  %s1342_s6 = int_to_ptr.vmem [resolvable:$true] %s1341_s6 }
  0x59   :  { %179 = vmatprep.subr.mxu0 %v172_v3  ;;  %v163_v9 = vld [vmem:[#allocation7 + $0x110] sm:$0xff]  ;;  %v162_v10 = vld [vmem:[#allocation7 + $0x108] sm:$0xff]  ;;  %v160_v11 = vld [vmem:[#allocation7 + $0xf8] sm:$0xff]  ;;  %s1817_s20 = scalar_lea.vmem %s1342_s6, 256  ;;  %p1822_p8 = scmp.lt.s32.totalorder %s1342_s6, %s1342_s6 }
  0x5a   :  { %180 = vmatpush1.msra.mxu0 %v171_v4  ;;  %v159_v12 = vld [vmem:[#allocation7 + $0xf0] sm:$0xff]  ;;  %v157_v13 = vld [vmem:[#allocation7 + $0xe0] sm:$0xff]  ;;  %v156_v15 = vld [vmem:[#allocation7 + $0xd8] sm:$0xff]  ;;  %p1818_p7 = scmp.ne.s32.totalorder %s1342_s6, %s1817_s20  ;;  %p1823_p9 = scmp.lt.s32.totalorder %s1817_s20, %s1817_s20 }
  0x5b   :  { %181 = vmatprep.subr.mxu0 %v169_v5  ;;  %v1968_v14 = vld [vmem:[#allocation2] sm:$0xff]  ;;  %v176_v16 = vld [vmem:[#allocation7 + $0x178] sm:$0xff]  ;;  %v154_v18 = vld [vmem:[#allocation7 + $0xc8] sm:$0xff] }
  0x5c   :  { %182 = vmatpush1.msra.mxu0 %v168_v6  ;;  %v173_v17 = vld [vmem:[#allocation7 + $0x160] sm:$0xff]  ;;  %1496 = vmatprep.mubr.f32.mxu1 %v1968_v14  ;;  %v170_v20 = vld [vmem:[#allocation7 + $0x148] sm:$0xff]  ;;  %v151_v21 = vld [vmem:[#allocation7 + $0xb0] sm:$0xff]  ;;  %p1824_p10 = por %p1823_p9, %p1822_p8 }
  0x5d   :  { %183 = vmatprep.subr.mxu0 %v166_v7  ;;  %1464 = vmatprep.subr.mxu1 %v176_v16  ;;  %v153_v19 = vld [vmem:[#allocation7 + $0xc0] sm:$0xff]  ;;  %v150_v22 = vld [vmem:[#allocation7 + $0xa8] sm:$0xff]  ;;  %v167_v23 = vld [vmem:[#allocation7 + $0x130] sm:$0xff] }
  0x5e   :  { %184 = vmatpush1.msra.mxu0 %v165_v8  ;;  %1465 = vmatpush3.msra.mxu1 %v176_v16  ;;  %v148_v24 = vld [vmem:[#allocation7 + $0x98] sm:$0xff]  ;;  %v147_v25 = vld [vmem:[#allocation7 + $0x90] sm:$0xff]  ;;  %v145_v27 = vld [vmem:[#allocation7 + $0x80] sm:$0xff]  ;;  %p1825_p11 = pnand %p1824_p10, %p1818_p7 }
  0x5f   :  { %185 = vmatprep.subr.mxu0 %v163_v9  ;;  %1466 = vmatprep.subr.mxu1 %v173_v17  ;;  %v164_v26 = vld [vmem:[#allocation7 + $0x118] sm:$0xff]  ;;  %v161_v29 = vld [vmem:[#allocation7 + $0x100] sm:$0xff]  ;;  %v142_v30 = vld [vmem:[#allocation7 + $0x68] sm:$0xff] }
  0x60   :  { %186 = vmatpush1.msra.mxu0 %v162_v10  ;;  %1467 = vmatpush3.msra.mxu1 %v173_v17  ;;  %v144_v28 = vld [vmem:[#allocation7 + $0x78] sm:$0xff]  ;;  %v141_v31 = vld [vmem:[#allocation7 + $0x60] sm:$0xff]  ;;  %v158_v32 = vld [vmem:[#allocation7 + $0xe8] sm:$0xff] }
  0x61   :  { %187 = vmatprep.subr.mxu0 %v160_v11  ;;  %1468 = vmatprep.subr.mxu1 %v170_v20  ;;  %v139_v33 = vld [vmem:[#allocation7 + $0x50] sm:$0xff]  ;;  %v138_v34 = vld [vmem:[#allocation7 + $0x48] sm:$0xff]  ;;  %v136_v36 = vld [vmem:[#allocation7 + $0x38] sm:$0xff] }
  0x62   :  { %188 = vmatpush1.msra.mxu0 %v159_v12  ;;  %1469 = vmatpush3.msra.mxu1 %v170_v20  ;;  %v155_v35 = vld [vmem:[#allocation7 + $0xd0] sm:$0xff]  ;;  %v152_v38 = vld [vmem:[#allocation7 + $0xb8] sm:$0xff]  ;;  %v133_v39 = vld [vmem:[#allocation7 + $0x20] sm:$0xff] }
  0x63   :  { %189 = vmatprep.subr.mxu0 %v157_v13  ;;  %1470 = vmatprep.subr.mxu1 %v167_v23  ;;  %v135_v37 = vld [vmem:[#allocation7 + $0x30] sm:$0xff]  ;;  %v132_v40 = vld [vmem:[#allocation7 + $0x18] sm:$0xff]  ;;  %v149_v41 = vld [vmem:[#allocation7 + $0xa0] sm:$0xff] }
  0x64   :  { %190 = vmatpush1.msra.mxu0 %v156_v15  ;;  %1471 = vmatpush3.msra.mxu1 %v167_v23  ;;  %v130_v42 = vld [vmem:[#allocation7 + $0x8] sm:$0xff]  ;;  %v129_v43 = vld [vmem:[#allocation7] sm:$0xff]  ;;  %v143_v45 = vld [vmem:[#allocation7 + $0x70] sm:$0xff] }
  0x65   :  { %191 = vmatprep.subr.mxu0 %v154_v18  ;;  %1472 = vmatprep.subr.mxu1 %v164_v26  ;;  %v146_v44 = vld [vmem:[#allocation7 + $0x88] sm:$0xff]  ;;  %v140_v46 = vld [vmem:[#allocation7 + $0x58] sm:$0xff]  ;;  %v137_v48 = vld [vmem:[#allocation7 + $0x40] sm:$0xff] }
  0x66   :  { %192 = vmatpush1.msra.mxu0 %v153_v19  ;;  %1473 = vmatpush3.msra.mxu1 %v164_v26  ;;  %v1973_v47 = vld [vmem:[#allocation2 + $0x8] sm:$0xff]  ;;  %v131_v50 = vld [vmem:[#allocation7 + $0x10] sm:$0xff]  ;;  %v653_v15 = vld [vmem:[#allocation8 + $0x78] sm:$0xff] }
  0x67   :  { %193 = vmatprep.subr.mxu0 %v151_v21  ;;  %1474 = vmatprep.subr.mxu1 %v161_v29  ;;  %v134_v49 = vld [vmem:[#allocation7 + $0x28] sm:$0xff]  ;;  %v652_v18 = vld [vmem:[#allocation8 + $0x70] sm:$0xff]  ;;  %v650_v20 = vld [vmem:[#allocation8 + $0x60] sm:$0xff] }
  0x68   :  { %194 = vmatpush1.msra.mxu0 %v150_v22  ;;  %1475 = vmatpush3.msra.mxu1 %v161_v29  ;;  %v651_v19 = vld [vmem:[#allocation8 + $0x68] sm:$0xff]  ;;  %v649_v21 = vld [vmem:[#allocation8 + $0x58] sm:$0xff]  ;;  %v648_v22 = vld [vmem:[#allocation8 + $0x50] sm:$0xff] }
  0x69   :  { %195 = vmatprep.subr.mxu0 %v148_v24  ;;  %1476 = vmatprep.subr.mxu1 %v158_v32  ;;  %v647_v23 = vld [vmem:[#allocation8 + $0x48] sm:$0xff]  ;;  %v646_v24 = vld [vmem:[#allocation8 + $0x40] sm:$0xff]  ;;  %v644_v26 = vld [vmem:[#allocation8 + $0x30] sm:$0xff] }
  0x6a   :  { %196 = vmatpush1.msra.mxu0 %v147_v25  ;;  %1477 = vmatpush3.msra.mxu1 %v158_v32  ;;  %v645_v25 = vld [vmem:[#allocation8 + $0x38] sm:$0xff]  ;;  %v638_v32 = vld [vmem:[#allocation8] sm:$0xff] }
  0x6b   :  { %197 = vmatprep.subr.mxu0 %v145_v27  ;;  %1478 = vmatprep.subr.mxu1 %v155_v35  ;;  %v643_v27 = vld [vmem:[#allocation8 + $0x28] sm:$0xff]  ;;  %v641_v29 = vld [vmem:[#allocation8 + $0x18] sm:$0xff] }
  0x6c   :  { %198 = vmatpush1.msra.mxu0 %v144_v28  ;;  %1479 = vmatpush3.msra.mxu1 %v155_v35  ;;  %v642_v28 = vld [vmem:[#allocation8 + $0x20] sm:$0xff]  ;;  %v747_v35 = vld [vmem:[#allocation10 + $0x70] sm:$0xff] }
  0x6d   :  { %199 = vmatprep.subr.mxu0 %v142_v30  ;;  %1480 = vmatprep.subr.mxu1 %v152_v38  ;;  %v640_v30 = vld [vmem:[#allocation8 + $0x10] sm:$0xff] }
  0x6e   :  { %200 = vmatpush1.msra.mxu0 %v141_v31  ;;  %1481 = vmatpush3.msra.mxu1 %v152_v38  ;;  %v639_v31 = vld [vmem:[#allocation8 + $0x8] sm:$0xff]  ;;  %v744_v38 = vld [vmem:[#allocation10 + $0x58] sm:$0xff] }
  0x6f   :  { %201 = vmatprep.subr.mxu0 %v139_v33  ;;  %1482 = vmatprep.subr.mxu1 %v149_v41  ;;  %v748_v33 = vld [vmem:[#allocation10 + $0x78] sm:$0xff] }
  0x70   :  { %202 = vmatpush1.msra.mxu0 %v138_v34  ;;  %1483 = vmatpush3.msra.mxu1 %v149_v41  ;;  %v855_v34 = vld [vmem:[#allocation11 + $0xf8] sm:$0xff]  ;;  %v741_v41 = vld [vmem:[#allocation10 + $0x40] sm:$0xff] }
  0x71   :  { %203 = vmatprep.subr.mxu0 %v136_v36  ;;  %1484 = vmatprep.subr.mxu1 %v146_v44  ;;  %v746_v36 = vld [vmem:[#allocation10 + $0x68] sm:$0xff] }
  0x72   :  { %204 = vmatpush1.msra.mxu0 %v135_v37  ;;  %1485 = vmatpush3.msra.mxu1 %v146_v44  ;;  %v745_v37 = vld [vmem:[#allocation10 + $0x60] sm:$0xff]  ;;  %v738_v44 = vld [vmem:[#allocation10 + $0x28] sm:$0xff] }
  0x73   :  { %205 = vmatprep.subr.mxu0 %v133_v39  ;;  %1486 = vmatprep.subr.mxu1 %v143_v45  ;;  %v743_v39 = vld [vmem:[#allocation10 + $0x50] sm:$0xff] }
  0x74   :  { %206 = vmatpush1.msra.mxu0 %v132_v40  ;;  %1487 = vmatpush3.msra.mxu1 %v143_v45  ;;  %v742_v40 = vld [vmem:[#allocation10 + $0x48] sm:$0xff]  ;;  %v737_v45 = vld [vmem:[#allocation10 + $0x20] sm:$0xff] }
  0x75   :  { %207 = vmatprep.subr.mxu0 %v130_v42  ;;  %1488 = vmatprep.subr.mxu1 %v140_v46  ;;  %v740_v42 = vld [vmem:[#allocation10 + $0x38] sm:$0xff] }
  0x76   :  { %208 = vmatpush1.msra.mxu0 %v129_v43  ;;  %1489 = vmatpush3.msra.mxu1 %v140_v46  ;;  %v739_v43 = vld [vmem:[#allocation10 + $0x30] sm:$0xff]  ;;  %v736_v46 = vld [vmem:[#allocation10 + $0x18] sm:$0xff] }
  0x77   :  { %242 = vmatmul.mubr.f32.vlgmr.msra.gmra.mxu0 %v1968_v14  ;;  %1490 = vmatprep.subr.mxu1 %v137_v48 }
  0x78   :  { %247 = vmatprep.mubr.f32.mxu0 %v1882_v0  ;;  %1491 = vmatpush3.msra.mxu1 %v137_v48  ;;  %v735_v48 = vld [vmem:[#allocation10 + $0x10] sm:$0xff] }
  0x79   :  { %1492 = vmatprep.subr.mxu1 %v134_v49  ;;  %1554 = vmatprep.subr.mxu0 %v748_v33 }
  0x7a   :  { %1493 = vmatpush3.msra.mxu1 %v134_v49  ;;  %1555 = vmatpush3.msra.mxu0 %v748_v33 }
  0x7b   :  { %248 = vmatmul.mubr.f32.gmra.mxu0 %v1973_v47  ;;  %1494 = vmatprep.subr.mxu1 %v131_v50 }
  0x7c   :  { %1495 = vmatpush3.msra.mxu1 %v131_v50  ;;  %1556 = vmatprep.subr.mxu0 %v747_v35 }
  0x7d   :  { %1497 = vmatmul.mubr.f32.vlgmr.msra.gmra.mxu1 %v1973_v47  ;;  %1499 = vmatprep.subr.mxu1 %v1882_v0 }
  0x7e   :  { %1501 = vmatprep.mubr.msk.f32.mxu1 %vm1883_vm0, %v1882_v0  ;;  %1557 = vmatpush3.msra.mxu0 %v747_v35 }
  0x7f   :  { %1558 = vmatprep.subr.mxu0 %v746_v36 }
  0x80   :  { %1559 = vmatpush3.msra.mxu0 %v746_v36 }
  0x81   :  { %1560 = vmatprep.subr.mxu0 %v745_v37 }
  0x82   :  { %1561 = vmatpush3.msra.mxu0 %v745_v37 }
  0x83   :  { %1562 = vmatprep.subr.mxu0 %v744_v38 }
  0x84   :  { %1563 = vmatpush3.msra.mxu0 %v744_v38 }
  0x85   :  { %1564 = vmatprep.subr.mxu0 %v743_v39 }
  0x86   :  { %1565 = vmatpush3.msra.mxu0 %v743_v39 }
  0x87   :  { %1566 = vmatprep.subr.mxu0 %v742_v40 }
  0x88   :  { %1567 = vmatpush3.msra.mxu0 %v742_v40 }
  0x89   :  { %1568 = vmatprep.subr.mxu0 %v741_v41 }
  0x8a   :  { %1569 = vmatpush3.msra.mxu0 %v741_v41 }
  0x8b   :  { %1570 = vmatprep.subr.mxu0 %v740_v42 }
  0x8c   :  { %1571 = vmatpush3.msra.mxu0 %v740_v42 }
  0x8d   :  { %1572 = vmatprep.subr.mxu0 %v739_v43 }
  0x8e   :  { %1573 = vmatpush3.msra.mxu0 %v739_v43 }
  0x8f   :  { %1574 = vmatprep.subr.mxu0 %v738_v44 }
  0x90   :  { %1575 = vmatpush3.msra.mxu0 %v738_v44 }
  0x91   :  { %1576 = vmatprep.subr.mxu0 %v737_v45 }
  0x92   :  { %1577 = vmatpush3.msra.mxu0 %v737_v45 }
  0x93   :  { %1578 = vmatprep.subr.mxu0 %v736_v46 }
  0x94   :  { %1579 = vmatpush3.msra.mxu0 %v736_v46 }
  0x95   :  { %1580 = vmatprep.subr.mxu0 %v735_v48 }
  0x96   :  { %1581 = vmatpush3.msra.mxu0 %v735_v48 }
 0x137   :  { %v243_v51 = vpop.f32.mrf.mxu0 }
 0x139   :  { %v245_v52 = vpop.f32.mrf.mxu0 }
 0x13a   :  { %1500 = vmatpush3.xpose.msra.mxu1 %v245_v52 }
 0x13b   :  { %v249_v53 = vpop.f32.mrf.mxu0  ;;  %1504 = vmatprep.subr.mxu1 %v1882_v0 }
 0x13d   :  { %v251_v54 = vpop.f32.mrf.mxu0  ;;  %1502 = vmatmul.mubr.f32.vlgmr.msra.gmra.mxu1 %v243_v51  ;;  %v1498_v55 = vpop.f32.mrf.mxu1  ;;  %v854_v51 = vld [vmem:[#allocation11 + $0xf0] sm:$0xff] }
 0x13e   :  { %1505 = vmatpush3.xpose.msra.mxu1 %v251_v54  ;;  %1506 = vmatprep.mubr.msk.f32.mxu1 %vm1883_vm0, %v1882_v0  ;;  %v852_v54 = vld [vmem:[#allocation11 + $0xe0] sm:$0xff] }
 0x13f   :  { %1509 = vmatprep.subr.mxu1 %v1882_v0  ;;  %v320_v56 = vpop.f32.mrf.mxu1 }
 0x141   :  { %1507 = vmatmul.mubr.f32.vlgmr.msra.gmra.mxu1 %v249_v53  ;;  %v853_v53 = vld [vmem:[#allocation11 + $0xe8] sm:$0xff] }
 0x142   :  { %1511 = vmatprep.mubr.msk.f32.mxu1 %vm1883_vm0, %v1882_v0  ;;  %1510 = vmatpush3.msra.mxu1 %v320_v56  ;;  %v851_v56 = vld [vmem:[#allocation11 + $0xd8] sm:$0xff] }
 0x143   :  { %1514 = vmatprep.subr.mxu1 %v1882_v0 }
 0x1fd   :  { %v395_v57 = vpop.f32.mrf.mxu1 }
 0x1fe   :  { %v470_v58 = vsel %vm469_vm1, %v395_v57, -inf }
 0x1ff   :  { %471 = vmax.xlane.f32.xlu0 %v470_v58  ;;  %v1503_v59 = vpop.f32.mrf.mxu1  ;;  %v849_v58 = vld [vmem:[#allocation11 + $0xc8] sm:$0xff] }
 0x200   :  { %v848_v59 = vld [vmem:[#allocation11 + $0xc0] sm:$0xff] }
 0x201   :  { %v465_v60 = vpop.f32.mrf.mxu1 }
 0x202   :  { %v473_v61 = vsel %vm469_vm1, %v465_v60, -inf }
 0x203   :  { %474 = vmax.xlane.f32.xlu0 %v473_v61  ;;  %v1508_v62 = vpop.f32.mrf.mxu1  ;;  %v846_v61 = vld [vmem:[#allocation11 + $0xb0] sm:$0xff] }
 0x204   :  { %v845_v62 = vld [vmem:[#allocation11 + $0xa8] sm:$0xff] }
 0x288   :  { %v472_v63 = vpop.xlane.xlu0 %471 }
 0x289   :  { %v476_v1 = vsub.f32 %v395_v57, %v472_v63  ;;  %v850_v57 = vld [vmem:[#allocation11 + $0xd0] sm:$0xff]  ;;  %v844_v63 = vld [vmem:[#allocation11 + $0xa0] sm:$0xff] }
 0x28b   :  { %v478_v2 = vmul.f32 1.442695, %v476_v1  ;;  %v843_v1 = vld [vmem:[#allocation11 + $0x98] sm:$0xff] }
 0x28c   :  { %v475_v3 = vpop.xlane.xlu0 %474 }
 0x28d   :  { %1661 = vpow2.f32 %v478_v2  ;;  %v477_v4 = vsub.f32 %v465_v60, %v475_v3  ;;  %v847_v60 = vld [vmem:[#allocation11 + $0xb8] sm:$0xff]  ;;  %v842_v2 = vld [vmem:[#allocation11 + $0x90] sm:$0xff]  ;;  %v841_v3 = vld [vmem:[#allocation11 + $0x88] sm:$0xff] }
 0x28f   :  { %v480_v5 = vmul.f32 1.442695, %v477_v4  ;;  %v840_v4 = vld [vmem:[#allocation11 + $0x80] sm:$0xff] }
 0x291   :  { %1663 = vpow2.f32 %v480_v5  ;;  %v839_v5 = vld [vmem:[#allocation11 + $0x78] sm:$0xff] }
 0x29a   :  { %v1662_v6 = vpop.eup %1661 }
 0x29b   :  { %v482_v7 = vsel %vm469_vm1, %v1662_v6, 0.0 }
 0x29c   :  { %483 = vadd.xlane.f32.xlu1 %v482_v7  ;;  %v837_v7 = vld [vmem:[#allocation11 + $0x68] sm:$0xff] }
 0x29e   :  { %v1664_v8 = vpop.eup %1663 }
 0x29f   :  { %v485_v9 = vsel %vm469_vm1, %v1664_v8, 0.0 }
 0x2a0   :  { %486 = vadd.xlane.f32.xlu1 %v485_v9  ;;  %v835_v9 = vld [vmem:[#allocation11 + $0x58] sm:$0xff] }
 0x325   :  { %v484_v10 = vpop.xlane.xlu1 %483 }
 0x326   :  { %1665 = vrcp.f32 %v484_v10  ;;  %v834_v10 = vld [vmem:[#allocation11 + $0x50] sm:$0xff] }
 0x329   :  { %v487_v11 = vpop.xlane.xlu1 %486 }
 0x32a   :  { %1667 = vrcp.f32 %v487_v11  ;;  %v833_v11 = vld [vmem:[#allocation11 + $0x48] sm:$0xff] }
 0x333   :  { %v1666_v12 = vpop.eup %1665 }
 0x334   :  { %v489_v13 = vmul.f32 %v1666_v12, %v1662_v6  ;;  %v838_v6 = vld [vmem:[#allocation11 + $0x70] sm:$0xff]  ;;  %v832_v12 = vld [vmem:[#allocation11 + $0x40] sm:$0xff] }
 0x336   :  { %1512 = vmatmul.mubr.msk.f32.vlgmr.msra.gmra.mxu1 %vm469_vm1, %v489_v13  ;;  %v831_v13 = vld [vmem:[#allocation11 + $0x38] sm:$0xff] }
 0x337   :  { %v1668_v16 = vpop.eup %1667  ;;  %1515 = vmatpush3.msra.mxu1 %v1498_v55  ;;  %1516 = vmatprep.mubr.msk.f32.mxu1 %vm1883_vm0, %v1882_v0 }
 0x338   :  { %v491_v17 = vmul.f32 %v1668_v16, %v1664_v8  ;;  %1519 = vmatprep.subr.mxu1 %v653_v15  ;;  %v836_v8 = vld [vmem:[#allocation11 + $0x60] sm:$0xff]  ;;  %v829_v16 = vld [vmem:[#allocation11 + $0x28] sm:$0xff] }
 0x33a   :  { %1517 = vmatmul.mubr.msk.f32.vlgmr.msra.gmra.mxu1 %vm469_vm1, %v491_v17  ;;  %v828_v17 = vld [vmem:[#allocation11 + $0x20] sm:$0xff] }
 0x33b   :  { %1520 = vmatpush3.msra.mxu1 %v653_v15  ;;  %v830_v15 = vld [vmem:[#allocation11 + $0x30] sm:$0xff] }
 0x33c   :  { %1521 = vmatprep.subr.mxu1 %v652_v18 }
 0x33d   :  { %1522 = vmatpush3.msra.mxu1 %v652_v18  ;;  %v734_v18 = vld [vmem:[#allocation10 + $0x8] sm:$0xff] }
 0x33e   :  { %1523 = vmatprep.subr.mxu1 %v651_v19  ;;  %1582 = vmatprep.subr.mxu0 %v734_v18 }
 0x33f   :  { %1524 = vmatpush3.msra.mxu1 %v651_v19  ;;  %v827_v19 = vld [vmem:[#allocation11 + $0x18] sm:$0xff]  ;;  %1583 = vmatpush3.msra.mxu0 %v734_v18 }
 0x340   :  { %1525 = vmatprep.subr.mxu1 %v650_v20 }
 0x341   :  { %1526 = vmatpush3.msra.mxu1 %v650_v20  ;;  %v826_v20 = vld [vmem:[#allocation11 + $0x10] sm:$0xff] }
 0x342   :  { %1527 = vmatprep.subr.mxu1 %v649_v21 }
 0x343   :  { %1528 = vmatpush3.msra.mxu1 %v649_v21  ;;  %v733_v21 = vld [vmem:[#allocation10] sm:$0xff] }
 0x344   :  { %1529 = vmatprep.subr.mxu1 %v648_v22  ;;  %1584 = vmatprep.subr.mxu0 %v733_v21 }
 0x345   :  { %1530 = vmatpush3.msra.mxu1 %v648_v22  ;;  %v825_v22 = vld [vmem:[#allocation11 + $0x8] sm:$0xff]  ;;  %1585 = vmatpush3.msra.mxu0 %v733_v21 }
 0x346   :  { %1531 = vmatprep.subr.mxu1 %v647_v23  ;;  %1589 = vmatprep.subr.mxu0 %v1882_v0 }
 0x347   :  { %1532 = vmatpush3.msra.mxu1 %v647_v23  ;;  %v1996_v23 = vld [vmem:[#allocation5] sm:$0xff] }
 0x348   :  { %1533 = vmatprep.subr.mxu1 %v646_v24  ;;  %1586 = vmatprep.mubr.f32.mxu0 %v1996_v23 }
 0x349   :  { %1534 = vmatpush3.msra.mxu1 %v646_v24  ;;  %v824_v24 = vld [vmem:[#allocation11] sm:$0xff] }
 0x34a   :  { %1535 = vmatprep.subr.mxu1 %v645_v25 }
 0x34b   :  { %1536 = vmatpush3.msra.mxu1 %v645_v25  ;;  %v1998_v25 = vld [vmem:[#allocation5 + $0x8] sm:$0xff] }
 0x34c   :  { %1537 = vmatprep.subr.mxu1 %v644_v26  ;;  %1587 = vmatmul.mubr.f32.vlgmr.msra.gmra.mxu0 %v1998_v25 }
 0x34d   :  { %1538 = vmatpush3.msra.mxu1 %v644_v26  ;;  %1591 = vmatprep.mubr.msk.f32.mxu0 %vm1883_vm0, %v1882_v0 }
 0x34e   :  { %1539 = vmatprep.subr.mxu1 %v643_v27 }
 0x34f   :  { %1540 = vmatpush3.msra.mxu1 %v643_v27 }
 0x350   :  { %1541 = vmatprep.subr.mxu1 %v642_v28 }
 0x351   :  { %1542 = vmatpush3.msra.mxu1 %v642_v28 }
 0x352   :  { %1543 = vmatprep.subr.mxu1 %v641_v29 }
 0x353   :  { %1544 = vmatpush3.msra.mxu1 %v641_v29 }
 0x354   :  { %1545 = vmatprep.subr.mxu1 %v640_v30 }
 0x355   :  { %1546 = vmatpush3.msra.mxu1 %v640_v30 }
 0x356   :  { %1547 = vmatprep.subr.mxu1 %v639_v31 }
 0x357   :  { %1548 = vmatpush3.msra.mxu1 %v639_v31 }
 0x358   :  { %1549 = vmatprep.subr.mxu1 %v638_v32 }
 0x359   :  { %1550 = vmatpush3.msra.mxu1 %v638_v32 }
 0x35a   :  { %856 = vmatprep.subr.mxu1 %v855_v34 }
 0x3f6   :  { %v561_v49 = vpop.f32.mrf.mxu1 }
 0x3f7   :  { %1551 = vmatprep.mubr.f32.mxu1 %v561_v49 }
 0x3f8   :  { %v1513_v50 = vpop.f32.mrf.mxu1 }
 0x3fa   :  { %v634_v52 = vpop.f32.mrf.mxu1 }
 0x3fb   :  { %1552 = vmatmul.mubr.f32.vlgmr.msra.gmra.mxu1 %v634_v52 }
 0x3fc   :  { %v1518_v55 = vpop.f32.mrf.mxu1  ;;  %857 = vmatpush1.msra.mxu1 %v854_v51  ;;  %920 = vmatprep.mubr.f32.mxu1 %v1882_v0 }
 0x3fd   :  { %858 = vmatprep.subr.mxu1 %v853_v53 }
 0x3fe   :  { %859 = vmatpush1.msra.mxu1 %v852_v54  ;;  %v1256_v54 = vld [vmem:[#allocation13 + $0x78] sm:$0xff] }
 0x3ff   :  { %860 = vmatprep.subr.mxu1 %v851_v56 }
 0x400   :  { %861 = vmatpush1.msra.mxu1 %v850_v57 }
 0x401   :  { %862 = vmatprep.subr.mxu1 %v849_v58  ;;  %v1255_v58 = vld [vmem:[#allocation13 + $0x70] sm:$0xff] }
 0x402   :  { %863 = vmatpush1.msra.mxu1 %v848_v59  ;;  %v1254_v59 = vld [vmem:[#allocation13 + $0x68] sm:$0xff] }
 0x403   :  { %864 = vmatprep.subr.mxu1 %v847_v60  ;;  %v1253_v60 = vld [vmem:[#allocation13 + $0x60] sm:$0xff] }
 0x404   :  { %865 = vmatpush1.msra.mxu1 %v846_v61  ;;  %v1252_v61 = vld [vmem:[#allocation13 + $0x58] sm:$0xff] }
 0x405   :  { %866 = vmatprep.subr.mxu1 %v845_v62  ;;  %v1251_v62 = vld [vmem:[#allocation13 + $0x50] sm:$0xff] }
 0x406   :  { %867 = vmatpush1.msra.mxu1 %v844_v63  ;;  %v1250_v63 = vld [vmem:[#allocation13 + $0x48] sm:$0xff] }
 0x407   :  { %868 = vmatprep.subr.mxu1 %v843_v1  ;;  %v1248_v1 = vld [vmem:[#allocation13 + $0x38] sm:$0xff] }
 0x408   :  { %869 = vmatpush1.msra.mxu1 %v842_v2  ;;  %v1247_v2 = vld [vmem:[#allocation13 + $0x30] sm:$0xff] }
 0x409   :  { %870 = vmatprep.subr.mxu1 %v841_v3  ;;  %v1246_v3 = vld [vmem:[#allocation13 + $0x28] sm:$0xff] }
 0x40a   :  { %871 = vmatpush1.msra.mxu1 %v840_v4  ;;  %v1245_v4 = vld [vmem:[#allocation13 + $0x20] sm:$0xff] }
 0x40b   :  { %872 = vmatprep.subr.mxu1 %v839_v5  ;;  %v1244_v5 = vld [vmem:[#allocation13 + $0x18] sm:$0xff] }
 0x40c   :  { %873 = vmatpush1.msra.mxu1 %v838_v6  ;;  %v1588_v30 = vpop.f32.mrf.mxu0  ;;  %v1243_v6 = vld [vmem:[#allocation13 + $0x10] sm:$0xff] }
 0x40d   :  { %874 = vmatprep.subr.mxu1 %v837_v7  ;;  %v1242_v7 = vld [vmem:[#allocation13 + $0x8] sm:$0xff] }
 0x40e   :  { %875 = vmatpush1.msra.mxu1 %v836_v8  ;;  %v815_v33 = vpop.f32.mrf.mxu0  ;;  %v1241_v8 = vld [vmem:[#allocation13] sm:$0xff] }
 0x40f   :  { %876 = vmatprep.subr.mxu1 %v835_v9 }
 0x410   :  { %877 = vmatpush1.msra.mxu1 %v834_v10 }
 0x411   :  { %878 = vmatprep.subr.mxu1 %v833_v11 }
 0x412   :  { %879 = vmatpush1.msra.mxu1 %v832_v12 }
 0x413   :  { %880 = vmatprep.subr.mxu1 %v831_v13 }
 0x414   :  { %881 = vmatpush1.msra.mxu1 %v830_v15 }
 0x415   :  { %882 = vmatprep.subr.mxu1 %v829_v16 }
 0x416   :  { %883 = vmatpush1.msra.mxu1 %v828_v17 }
 0x417   :  { %884 = vmatprep.subr.mxu1 %v827_v19 }
 0x418   :  { %885 = vmatpush1.msra.mxu1 %v826_v20 }
 0x419   :  { %886 = vmatprep.subr.mxu1 %v825_v22 }
 0x41a   :  { %887 = vmatpush1.msra.mxu1 %v824_v24 }
 0x4bb   :  { %v1553_v26 = vpop.f32.mrf.mxu1 }
 0x4bc   :  { %v730_v27 = vadd.f32 %v1553_v26, %v1973_v47 }
 0x4bd   :  { %v720_v28 = vpop.f32.mrf.mxu1 }
 0x4be   :  { %732 = vst [vmem:[#allocation14 + $0x8] sm:$0xff] %v730_v27  ;;  %v729_v29 = vadd.f32 %v720_v28, %v1968_v14 }
 0x4c0   :  { %731 = vst [vmem:[#allocation14] sm:$0xff] %v729_v29  ;;  %921 = vmatmul.mubr.f32.vlgmr.msra.gmra.mxu1 %v729_v29 }
 0x4c1   :  { %926 = vmatprep.mubr.f32.mxu1 %v1882_v0 }
 0x4c4   :  { %927 = vmatmul.mubr.f32.gmra.mxu1 %v730_v27 }
 0x580   :  { %v922_v31 = vpop.f32.mrf.mxu1 }
 0x581   :  { %1590 = vmatpush3.xpose.msra.mxu0 %v922_v31 }
 0x582   :  { %v924_v32 = vpop.f32.mrf.mxu1  ;;  %1594 = vmatprep.subr.mxu0 %v1882_v0 }
 0x584   :  { %v928_v34 = vpop.f32.mrf.mxu1  ;;  %1592 = vmatmul.mubr.f32.vlgmr.msra.gmra.mxu0 %v815_v33 }
 0x585   :  { %1595 = vmatpush3.xpose.msra.mxu0 %v928_v34  ;;  %1596 = vmatprep.mubr.msk.f32.mxu0 %vm1883_vm0, %v1882_v0 }
 0x586   :  { %1599 = vmatprep.subr.mxu0 %v1882_v0  ;;  %v930_v55 = vpop.f32.mrf.mxu1 }
 0x588   :  { %1597 = vmatmul.mubr.f32.vlgmr.msra.gmra.mxu0 %v1588_v30 }
 0x589   :  { %1600 = vmatpush3.msra.mxu0 %v924_v32  ;;  %1601 = vmatprep.mubr.msk.f32.mxu0 %vm1883_vm0, %v1882_v0 }
 0x58a   :  { %1604 = vmatprep.subr.mxu0 %v1882_v0 }
 0x644   :  { %v999_v14 = vpop.f32.mrf.mxu0 }
 0x645   :  { %v1073_v47 = vsel %vm469_vm1, %v999_v14, -inf }
 0x646   :  { %1074 = vmax.xlane.f32.xlu0 %v1073_v47  ;;  %v1593_v35 = vpop.f32.mrf.mxu0 }
 0x648   :  { %v1069_v36 = vpop.f32.mrf.mxu0 }
 0x649   :  { %v1076_v37 = vsel %vm469_vm1, %v1069_v36, -inf }
 0x64a   :  { %1077 = vmax.xlane.f32.xlu1 %v1076_v37  ;;  %v1598_v38 = vpop.f32.mrf.mxu0 }
 0x6cf   :  { %v1075_v39 = vpop.xlane.xlu0 %1074 }
 0x6d0   :  { %v1079_v40 = vsub.f32 %v999_v14, %v1075_v39 }
 0x6d2   :  { %v1081_v41 = vmul.f32 1.442695, %v1079_v40 }
 0x6d3   :  { %v1078_v42 = vpop.xlane.xlu1 %1077 }
 0x6d4   :  { %1669 = vpow2.f32 %v1081_v41  ;;  %v1080_v43 = vsub.f32 %v1069_v36, %v1078_v42 }
 0x6d6   :  { %v1083_v44 = vmul.f32 1.442695, %v1080_v43 }
 0x6d8   :  { %1671 = vpow2.f32 %v1083_v44 }
 0x6e1   :  { %v1670_v45 = vpop.eup %1669 }
 0x6e2   :  { %v1085_v46 = vsel %vm469_vm1, %v1670_v45, 0.0 }
 0x6e3   :  { %1086 = vadd.xlane.f32.xlu0 %v1085_v46 }
 0x6e5   :  { %v1672_v48 = vpop.eup %1671 }
 0x6e6   :  { %v1088_v49 = vsel %vm469_vm1, %v1672_v48, 0.0 }
 0x6e7   :  { %1089 = vadd.xlane.f32.xlu1 %v1088_v49 }
 0x76c   :  { %v1087_v50 = vpop.xlane.xlu0 %1086 }
 0x76d   :  { %1673 = vrcp.f32 %v1087_v50 }
 0x770   :  { %v1090_v51 = vpop.xlane.xlu1 %1089 }
 0x771   :  { %1675 = vrcp.f32 %v1090_v51 }
 0x77a   :  { %v1674_v52 = vpop.eup %1673 }
 0x77b   :  { %v1092_v53 = vmul.f32 %v1674_v52, %v1670_v45 }
 0x77d   :  { %1602 = vmatmul.mubr.msk.f32.vlgmr.msra.gmra.mxu0 %vm469_vm1, %v1092_v53 }
 0x77e   :  { %v1676_v56 = vpop.eup %1675  ;;  %1605 = vmatpush3.msra.mxu0 %v930_v55  ;;  %1606 = vmatprep.mubr.msk.f32.mxu0 %vm1883_vm0, %v1882_v0  ;;  %v1249_v0 = vld [vmem:[#allocation13 + $0x40] sm:$0xff] }
 0x77f   :  { %v1094_v57 = vmul.f32 %v1676_v56, %v1672_v48  ;;  %1609 = vmatprep.subr.mxu0 %v1256_v54 }
 0x781   :  { %1607 = vmatmul.mubr.msk.f32.vlgmr.msra.gmra.mxu0 %vm469_vm1, %v1094_v57 }
 0x782   :  { %1610 = vmatpush3.msra.mxu0 %v1256_v54 }
 0x783   :  { %1611 = vmatprep.subr.mxu0 %v1255_v58 }
 0x784   :  { %1612 = vmatpush3.msra.mxu0 %v1255_v58 }
 0x785   :  { %1613 = vmatprep.subr.mxu0 %v1254_v59 }
 0x786   :  { %1614 = vmatpush3.msra.mxu0 %v1254_v59 }
 0x787   :  { %1615 = vmatprep.subr.mxu0 %v1253_v60 }
 0x788   :  { %1616 = vmatpush3.msra.mxu0 %v1253_v60 }
 0x789   :  { %1617 = vmatprep.subr.mxu0 %v1252_v61 }
 0x78a   :  { %1618 = vmatpush3.msra.mxu0 %v1252_v61 }
 0x78b   :  { %1619 = vmatprep.subr.mxu0 %v1251_v62 }
 0x78c   :  { %1620 = vmatpush3.msra.mxu0 %v1251_v62 }
 0x78d   :  { %1621 = vmatprep.subr.mxu0 %v1250_v63 }
 0x78e   :  { %1622 = vmatpush3.msra.mxu0 %v1250_v63 }
 0x78f   :  { %1623 = vmatprep.subr.mxu0 %v1249_v0 }
 0x790   :  { %1624 = vmatpush3.msra.mxu0 %v1249_v0 }
 0x791   :  { %1625 = vmatprep.subr.mxu0 %v1248_v1 }
 0x792   :  { %1626 = vmatpush3.msra.mxu0 %v1248_v1 }
 0x793   :  { %1627 = vmatprep.subr.mxu0 %v1247_v2 }
 0x794   :  { %1628 = vmatpush3.msra.mxu0 %v1247_v2 }
 0x795   :  { %1629 = vmatprep.subr.mxu0 %v1246_v3 }
 0x796   :  { %1630 = vmatpush3.msra.mxu0 %v1246_v3 }
 0x797   :  { %1631 = vmatprep.subr.mxu0 %v1245_v4 }
 0x798   :  { %1632 = vmatpush3.msra.mxu0 %v1245_v4 }
 0x799   :  { %1633 = vmatprep.subr.mxu0 %v1244_v5 }
 0x79a   :  { %1634 = vmatpush3.msra.mxu0 %v1244_v5 }
 0x79b   :  { %1635 = vmatprep.subr.mxu0 %v1243_v6 }
 0x79c   :  { %1636 = vmatpush3.msra.mxu0 %v1243_v6 }
 0x79d   :  { %1637 = vmatprep.subr.mxu0 %v1242_v7 }
 0x79e   :  { %1638 = vmatpush3.msra.mxu0 %v1242_v7 }
 0x79f   :  { %1639 = vmatprep.subr.mxu0 %v1241_v8 }
 0x7a0   :  { %1640 = vmatpush3.msra.mxu0 %v1241_v8 }
 0x83d   :  { %v1164_v9 = vpop.f32.mrf.mxu0 }
 0x83e   :  { %1641 = vmatprep.mubr.f32.mxu0 %v1164_v9 }
 0x83f   :  { %v1603_v10 = vpop.f32.mrf.mxu0 }
 0x841   :  { %v1237_v11 = vpop.f32.mrf.mxu0 }
 0x842   :  { %1642 = vmatmul.mubr.f32.vlgmr.msra.gmra.mxu0 %v1237_v11 }
 0x843   :  { %v1608_v12 = vpop.f32.mrf.mxu0 }
 0x844   :  { %1828 = shalt.err (!%p1825_p11)
}
 0x845   :  { %1347 = dma.vmem_to_hbm [thread:$0]  %s1342_s6, 256, %s2044_s7, [#allocation4], %s1871_s10, %s1871_s10, %s1872_s11  }
 0x846   :  { %s1885_s23 = smov [#allocation15]  }
 0x847   :  { %s1353_s24 = sshll.u32 %s1885_s23, 4  ;;  %s1354_s24 = int_to_ptr.vmem [resolvable:$true] %s1353_s24 }
 0x848   :  { %s1837_s3 = scalar_lea.vmem %s1354_s24, 256  ;;  %p1842_p13 = scmp.lt.s32.totalorder %s1354_s24, %s1354_s24 }
 0x849   :  { %p1838_p12 = scmp.ne.s32.totalorder %s1354_s24, %s1837_s3  ;;  %p1843_p0 = scmp.lt.s32.totalorder %s1837_s3, %s1837_s3 }
 0x84b   :  { %p1844_p1 = por %p1843_p0, %p1842_p13 }
 0x84d   :  { %p1845_p2 = pnand %p1844_p1, %p1838_p12 }
 0x902   :  { %v1643_v13 = vpop.f32.mrf.mxu0 }
 0x903   :  { %v1333_v15 = vadd.f32 %v1643_v13, %v1998_v25 }
 0x904   :  { %v1323_v16 = vpop.f32.mrf.mxu0 }
 0x905   :  { %1335 = vst [vmem:[#allocation15 + $0x8] sm:$0xff] %v1333_v15  ;;  %v1332_v17 = vadd.f32 %v1323_v16, %v1996_v23 }
 0x907   :  { %1334 = vst [vmem:[#allocation15] sm:$0xff] %v1332_v17 }
 0x908   :  { %1848 = shalt.err (!%p1845_p2)
}
 0x909   :  { %1359 = dma.vmem_to_hbm [thread:$0]  %s1354_s24, 256, %s2045_s8, [#allocation16], %s1871_s10, %s1871_s10, %s1872_s11  }
 0x90a   :  { %1865 = dma.done.wait [#allocation4], 256  }
 0x90b   :  { %1866 = vsyncadd [#allocation4], 4294967040 }
 0x90c   :  { %1867 = dma.done.wait [#allocation16], 256  }
 0x90d   :  { %1868 = vsyncadd [#allocation16], 4294967040 }
 0x90e   :  { %1366 = vsyncpa [#allocation3], 1 }
 0x90f   :  { %1367 = vsyncpa [#allocation6], 1 }
 0x910   :  { %1368 = vsyncpa [#allocation9], 1 }
 0x911   :  { %1369 = vsyncpa [#allocation12], 1 }
 0x912   :  { %1370 = vsyncpa [#allocation4], 1 }
 0x913   :  { %1371 = vsyncpa [#allocation16], 1 }

</bundles_post_ra>
